<compile_context>
chip_gen: v7x
topology: tpu7x:2x2x1
jax: 0.10.0
libtpu: 0.0.40
codegen_flags: <defaults>
</compile_context>

<pallas_src>
import jax
import jax.numpy as jnp
from jax.experimental import pallas as pl
from jax.experimental.pallas import tpu as pltpu


# ---------------------------------------------------------------------------
# Tile-size selection
# ---------------------------------------------------------------------------

def _pick_tile(dim: int, target: int, align: int) -> int:
    """Largest tile <= target that divides `dim` and is a multiple of `align`.

    Falls back to the full dimension (a full-extent block is always legal with
    respect to the (8, 128) tiling constraint)."""
    if dim <= target:
        return dim
    t = (target // align) * align
    while t >= align:
        if dim % t == 0:
            return t
        t -= align
    return dim


# 48 MiB: above v5e's 16 MiB default scoped VMEM, below v7x's 64 MiB physical.
_VMEM_LIMIT = 48 * 1024 * 1024


# ---------------------------------------------------------------------------
# Kernels
# ---------------------------------------------------------------------------

def _cls_kernel(h_ref, o_ref):
    # h_ref: [TB, 1, H] (only sequence position 0 is ever DMA'd); o_ref: [TB, H]
    o_ref[...] = h_ref[...][:, 0, :]


def _avg_kernel(mask_ref, den_ref, h_ref, o_ref, acc_ref):
    # Grid: (B // TB, S // TS); grid axis 1 (sequence) is the reduction axis.
    # mask_ref: [TB, TS]   den_ref: [TB, 1]   h_ref: [TB, TS, H]
    # o_ref:    [TB, H]    acc_ref: [TB, H] float32 VMEM scratch
    s = pl.program_id(1)

    @pl.when(s == 0)
    def _():
        acc_ref[...] = jnp.zeros_like(acc_ref)

    m = mask_ref[...]                      # input dtype, no full-tile upcast
    h = h_ref[...]
    # Multiply in the input dtype; accumulate in float32.
    acc_ref[...] += jnp.sum(h * m[:, :, None], axis=1, dtype=jnp.float32)

    @pl.when(s == pl.num_programs(1) - 1)
    def _():
        den = den_ref[...].astype(jnp.float32)            # [TB, 1]
        # NOTE: an all-zero attention-mask row yields inf/nan, matching the
        # PyTorch reference semantics.
        o_ref[...] = (acc_ref[...] / den).astype(o_ref.dtype)


def _avg_two_layers_kernel(mask_ref, den_ref, h0_ref, h1_ref, o_ref, acc_ref):
    # Same as _avg_kernel but pools (h0 + h1) / 2.
    s = pl.program_id(1)

    @pl.when(s == 0)
    def _():
        acc_ref[...] = jnp.zeros_like(acc_ref)

    m = mask_ref[...]
    hsum = h0_ref[...] + h1_ref[...]       # input-dtype add (VPU)
    acc_ref[...] += jnp.sum(hsum * m[:, :, None], axis=1, dtype=jnp.float32)

    @pl.when(s == pl.num_programs(1) - 1)
    def _():
        den = den_ref[...].astype(jnp.float32)
        # Fold the exact *0.5 into the single finalize step.
        o_ref[...] = (acc_ref[...] * 0.5 / den).astype(o_ref.dtype)


# ---------------------------------------------------------------------------
# pallas_call wrappers
# ---------------------------------------------------------------------------

def _cls_pool(last_hidden):
    B, S, H = last_hidden.shape
    dtype = last_hidden.dtype
    # Only sequence position 0 is needed: slice on the wrapper side (a single
    # strided DMA of B*H elements) so the kernel never touches the other
    # S - 1 positions.
    cls_tokens = last_hidden[:, 0:1, :]                    # [B, 1, H]
    tb = _pick_tile(B, 8, 8)
    return pl.pallas_call(
        _cls_kernel,
        out_shape=jax.ShapeDtypeStruct((B, H), dtype),
        grid_spec=pltpu.PrefetchScalarGridSpec(
            num_scalar_prefetch=0,
            grid=(B // tb,),
            in_specs=[pl.BlockSpec((tb, 1, H), lambda b: (b, 0, 0))],
            out_specs=pl.BlockSpec((tb, H), lambda b: (b, 0)),
        ),
        compiler_params=pltpu.CompilerParams(
            dimension_semantics=("parallel",),
            vmem_limit_bytes=_VMEM_LIMIT),
        cost_estimate=pl.CostEstimate(
            flops=0, transcendentals=0,
            bytes_accessed=2 * B * H * dtype.itemsize),
    )(cls_tokens)


def _masked_avg_call(kernel, attention_mask, hidden_list):
    B, S, H = hidden_list[0].shape
    dtype = hidden_list[0].dtype

    tb = _pick_tile(B, 8, 8)       # batch tile (sublane dim of mask / output)
    ts = _pick_tile(S, 256, 128)   # seq tile (lane dim of mask, reduction axis)
    grid = (B // tb, S // ts)

    # Numerator mask tile travels in the hidden-state dtype; the denominator is
    # pre-reduced in the wrapper so it is not re-accumulated across S steps.
    mask = attention_mask.astype(dtype)                                # [B, S]
    den = jnp.sum(attention_mask.astype(jnp.float32), axis=-1,
                  keepdims=True)                                       # [B, 1]

    h_spec = pl.BlockSpec((tb, ts, H), lambda b, s: (b, s, 0))
    in_specs = [
        pl.BlockSpec((tb, ts), lambda b, s: (b, s)),   # mask tile
        pl.BlockSpec((tb, 1), lambda b, s: (b, 0)),    # pre-reduced denominator
    ] + [h_spec] * len(hidden_list)

    hidden_bytes = sum(int(h.size) * h.dtype.itemsize for h in hidden_list)
    bytes_accessed = (hidden_bytes
                      + int(mask.size) * mask.dtype.itemsize
                      + int(den.size) * den.dtype.itemsize
                      + B * H * dtype.itemsize)
    flops = (2 + len(hidden_list)) * B * S * H

    return pl.pallas_call(
        kernel,
        out_shape=jax.ShapeDtypeStruct((B, H), dtype),
        grid_spec=pltpu.PrefetchScalarGridSpec(
            num_scalar_prefetch=0,
            grid=grid,
            in_specs=in_specs,
            out_specs=pl.BlockSpec((tb, H), lambda b, s: (b, 0)),
            scratch_shapes=[pltpu.VMEM((tb, H), jnp.float32)],
        ),
        compiler_params=pltpu.CompilerParams(
            dimension_semantics=("parallel", "arbitrary"),
            vmem_limit_bytes=_VMEM_LIMIT),
        cost_estimate=pl.CostEstimate(
            flops=flops, transcendentals=0, bytes_accessed=bytes_accessed),
    )(mask, den, *hidden_list)


def _avg_pool(attention_mask, last_hidden):
    return _masked_avg_call(_avg_kernel, attention_mask, [last_hidden])


def _avg_two_pool(attention_mask, hidden_a, hidden_b):
    return _masked_avg_call(_avg_two_layers_kernel, attention_mask,
                            [hidden_a, hidden_b])


# ---------------------------------------------------------------------------
# Pooler (mirrors the PyTorch module's forward semantics)
# ---------------------------------------------------------------------------

class Pooler:
    """Parameter-free poolers (Pallas TPU backed)."""

    def __init__(self, pooler_type):
        assert pooler_type in ['cls', 'cls_before_pooler', 'avg',
                               'avg_top2', 'avg_first_last'], \
            'unrecognized pooling type %s' % pooler_type
        self.pooler_type = pooler_type

    def __call__(self, attention_mask, last_hidden_state, hidden_states=None):
        if self.pooler_type in ['cls_before_pooler', 'cls']:
            return _cls_pool(last_hidden_state)
        elif self.pooler_type == 'avg':
            return _avg_pool(attention_mask, last_hidden_state)
        elif self.pooler_type == 'avg_first_last':
            return _avg_two_pool(attention_mask,
                                 hidden_states[0], hidden_states[-1])
        elif self.pooler_type == 'avg_top2':
            return _avg_two_pool(attention_mask,
                                 hidden_states[-2], hidden_states[-1])
        else:
            raise NotImplementedError


# ---------------------------------------------------------------------------
# Pure-JAX reference for correctness checking
# ---------------------------------------------------------------------------

def _ref_pool(pooler_type, attention_mask, last_hidden, hidden_states):
    m = attention_mask.astype(jnp.float32)
    if pooler_type in ['cls', 'cls_before_pooler']:
        return last_hidden[:, 0]
    if pooler_type == 'avg':
        h = last_hidden
    elif pooler_type == 'avg_first_last':
        h = (hidden_states[0] + hidden_states[-1]) / 2.0
    elif pooler_type == 'avg_top2':
        h = (hidden_states[-2] + hidden_states[-1]) / 2.0
    return (h * m[:, :, None]).sum(1) / m.sum(-1)[:, None]


if __name__ == "__main__":
    B, S, H, L = 2, 8, 32, 4  # batch, seq, hidden, number of layers

    key = jax.random.PRNGKey(0)
    k_layers, k_mask = jax.random.split(key)

    # Synthetic "encoder outputs": tuple of L+1 hidden states, last one is
    # last_hidden_state (as in HF BERT outputs.hidden_states).
    all_hidden = jax.random.normal(k_layers, (L + 1, B, S, H), jnp.float32)
    hidden_states = tuple(all_hidden[i] for i in range(L + 1))
    last_hidden = hidden_states[-1]

    # Attention mask with some padding (at least one valid token per row).
    lens = jnp.array([S, S - 3], dtype=jnp.int32)
    attention_mask = (jnp.arange(S)[None, :] < lens[:, None]).astype(jnp.float32)

    ok = True
    for ptype in ['cls', 'cls_before_pooler', 'avg', 'avg_top2',
                  'avg_first_last']:
        pooler = Pooler(ptype)
        out = pooler(attention_mask, last_hidden, hidden_states)
        out = jax.block_until_ready(out)
        ref = _ref_pool(ptype, attention_mask, last_hidden, hidden_states)
        if out.shape != (B, H):
            ok = False
        if not jnp.allclose(out, ref, atol=1e-5, rtol=1e-5):
            ok = False

    if ok:
        print("KERNEL_OK")
</pallas_src>

<mosaic_0001>
module attributes {stable_mosaic.version = 11 : i64} {
  func.func @_cls_kernel(%arg0: i32, %arg1: memref<2x1x32xf32, #tpu.memory_space<vmem>>, %arg2: memref<2x32xf32, #tpu.memory_space<vmem>>) attributes {dimension_semantics = [#tpu.dimension_semantics<parallel>], iteration_bounds = array<i64: 1>, scalar_prefetch = 0 : i64, scratch_operands = 0 : i64, tpu.core_type = #tpu.core_type<tc>, window_params = [{transform_indices = @transform_0, window_bounds = array<i64: 2, 1, 32>}, {transform_indices = @transform_1, window_bounds = array<i64: 2, 32>}]} {
    %c0 = arith.constant 0 : index
    %c0_0 = arith.constant 0 : index
    %c0_1 = arith.constant 0 : index
    %0 = vector.load %arg1[%c0, %c0_0, %c0_1] : memref<2x1x32xf32, #tpu.memory_space<vmem>>, vector<2x1x32xf32>
    %1 = vector.shape_cast %0 : vector<2x1x32xf32> to vector<2x32xf32>
    %c0_2 = arith.constant 0 : index
    %c0_3 = arith.constant 0 : index
    %2 = vector.load %arg2[%c0_2, %c0_3] : memref<2x32xf32, #tpu.memory_space<vmem>>, vector<2x32xf32>
    tpu.vector_store %arg2[%c0_2, %c0_3], %1 {strides = array<i32>} : memref<2x32xf32, #tpu.memory_space<vmem>>, vector<2x32xf32>,
    return
  }
  func.func @transform_0(%arg0: i32) -> (i32, i32, i32) {
    %c0_i32 = arith.constant 0 : i32
    %c0_i32_0 = arith.constant 0 : i32
    %c0_i32_1 = arith.constant 0 : i32
    return %arg0, %c0_i32, %c0_i32_0 : i32, i32, i32
  }
  func.func @transform_1(%arg0: i32) -> (i32, i32) {
    %c0_i32 = arith.constant 0 : i32
    %c0_i32_0 = arith.constant 0 : i32
    return %arg0, %c0_i32 : i32, i32
  }
}

</mosaic_0001>

<bundles_post_ra>
// kernel: tpu_custom_call.1
= control target key start
LH: loop header
LB: loop body
LE: loop exit
PB: predicated region body
PF: predicated region fallthrough
CT: control target
= control target key end

     0   :  { %6 = vsyncpa [#allocation3], 0  ;;  %s152_s0 = inlined_call_operand.hbm [shape: f32[2,1,32], index: 0, kind: input, shape index: {}]   ;;  %s153_s1 = inlined_call_operand.hbm [shape: f32[2,32], index: 1, kind: output, shape index: {}]  }
   0x1   :  { %7 = vsyncpa [#allocation4], 0  ;;  %s113_s6 = smov [#allocation2]   ;;  %s65_s10 = scalar_lea.hbm %s152_s0, 32 }
   0x2   :  { %s13_s7 = sshll.u32 %s113_s6, 4  ;;  %p66_p0 = scmp.ne.s32.totalorder %s152_s0, %s65_s10  ;;  %s14_s7 = int_to_ptr.vmem [resolvable:$true] %s13_s7 }
   0x3   :  { %p69_p1 = scmp.lt.u32.totalorder %s65_s10, %s152_s0 }
   0x5   :  { %p71_p2 = pnand %p69_p1, %p66_p0 }
   0x7   :  { %74 = shalt.err (!%p71_p2)
}
   0x8   :  { %s75_s15 = scalar_lea.vmem %s14_s7, 32  ;;  %p80_p4 = scmp.lt.s32.totalorder %s14_s7, %s14_s7 }
   0x9   :  { %p76_p3 = scmp.ne.s32.totalorder %s14_s7, %s75_s15  ;;  %p81_p5 = scmp.lt.s32.totalorder %s75_s15, %s75_s15 }
   0xb   :  { %p82_p6 = por %p81_p5, %p80_p4 }
   0xd   :  { %p83_p7 = pnand %p82_p6, %p76_p3 }
   0xf   :  { %86 = shalt.err (!%p83_p7)
}
  0x10   :  { %s114_s16 = smov 16   ;;  %s115_s17 = smov 1  }
  0x11   :  { %19 = dma.hbm_to_vmem [thread:$0]  %s152_s0, 32, %s14_s7, [#allocation3], %s114_s16, %s114_s16, %s115_s17  }
  0x12   :  { %109 = dma.done.wait [#allocation3], 32  }
  0x13   :  { %110 = vsyncadd [#allocation3], 4294967264  ;;  %v31_v0 = vlaneseq  ;;  %v116_v1 = vmov 1966171168   ;;  %v23_v6 = vld [vmem:[#allocation2] sm:$0x1] }
  0x14   :  { %v29_v2 = vunpack.c.l.s4 %v116_v1  ;;  %v24_v7 = vld [vmem:[#allocation2 + $0x1] sm:$0x1]  ;;  %s117_s20 = smov [#allocation5]   ;;  %vm43_vm0 = vcmask 254976  }
  0x15   :  { %v32_v3 = vshrl.u32 %v31_v0, 7  ;;  %v27_v8 = vcombine.low %v23_v6, %v24_v7  ;;  %s51_s21 = sshll.u32 %s117_s20, 4  ;;  %s52_s21 = int_to_ptr.vmem [resolvable:$true] %s51_s21 }
  0x16   :  { %v30_v4 = vunpack.c.0.s8 %v29_v2  ;;  %s87_s22 = scalar_lea.vmem %s52_s21, 32  ;;  %p92_p9 = scmp.lt.s32.totalorder %s52_s21, %s52_s21 }
  0x17   :  { %p88_p8 = scmp.ne.s32.totalorder %s52_s21, %s87_s22  ;;  %p93_p10 = scmp.lt.s32.totalorder %s87_s22, %s87_s22 }
  0x18   :  { %v33_v5 = vsub.s32 %v30_v4, %v32_v3 }
  0x19   :  { %p94_p11 = por %p93_p10, %p92_p9 }
  0x1a   :  { %v34_v9 = vrot.slane %v27_v8, %v33_v5 }
  0x1b   :  { %p95_p12 = pnand %p94_p11, %p88_p8 }
  0x1c   :  { %v41_v10 = vrot.slane %v34_v9, %v33_v5 }
  0x1e   :  { %44 = vst.msk [vmem:[#allocation5] sm:$0x3] %vm43_vm0, %v41_v10 }
  0x1f   :  { %98 = shalt.err (!%p95_p12)
}
  0x20   :  { %s99_s24 = scalar_lea.hbm %s153_s1, 32 }
  0x21   :  { %p100_p13 = scmp.ne.s32.totalorder %s153_s1, %s99_s24  ;;  %p103_p0 = scmp.lt.u32.totalorder %s99_s24, %s153_s1 }
  0x23   :  { %p105_p1 = pnand %p103_p0, %p100_p13 }
  0x25   :  { %108 = shalt.err (!%p105_p1)
}
  0x26   :  { %54 = dma.vmem_to_hbm [thread:$0]  %s52_s21, 32, %s153_s1, [#allocation4]  }
  0x27   :  { %111 = dma.done.wait [#allocation4], 32  }
  0x28   :  { %112 = vsyncadd [#allocation4], 4294967264 }
  0x29   :  { %58 = vsyncpa [#allocation3], 1 }
  0x2a   :  { %59 = vsyncpa [#allocation4], 1 }

</bundles_post_ra>
